<compile_context>
chip_gen: v6e
topology: v6e:2x2x1
jax: 0.10.0
libtpu: 0.0.40
codegen_flags: <defaults>
</compile_context>

<pallas_src>
import functools
from typing import List, Optional, Tuple

import jax
import jax.numpy as jnp
from jax.experimental import pallas as pl
from jax.experimental.pallas import tpu as pltpu

_LANE = 128  # lane width (last dim)


def _round_up(n: int, m: int) -> int:
    return ((n + m - 1) // m) * m


# ----------------------------------------------------------------------------
# Fused Pallas kernel
# ----------------------------------------------------------------------------
def _fused_kernel(x_ref, w1_ref, b1_ref, wb_ref, bb_ref, out_ref, idx_ref,
                  *, n_groups: int, g_pad: int):
    """relu(x@W1+b1) -> ONE wide matmul [group | head_0 | ... | head_{n-1}]
    -> one lane-dense store -> argmax over the group lanes of row 0 (SMEM)."""
    x = x_ref[...]                                                     # (B, S)
    h = jnp.dot(x, w1_ref[...], preferred_element_type=jnp.float32) + b1_ref[...]
    h = jnp.maximum(h, 0.0)                                            # (B, M_pad)

    # Single MXU push for group logits + every action head (lane-concatenated
    # weights), single bias add, one wide unmasked store.
    # NOTE: default MXU precision (bf16 single-pass); pass
    # precision=jax.lax.Precision.HIGHEST here if bit-closer fp32 parity with
    # PyTorch is ever required (cost is irrelevant at this size).
    out = jnp.dot(h, wb_ref[...], preferred_element_type=jnp.float32) + bb_ref[...]
    out_ref[...] = out                                                 # (B, W_pad)

    # argmax over the *real* group lanes of batch row 0 (first-max-wins),
    # mirroring torch.argmax(...).item() on a single-sample batch.  Padded
    # lanes are masked to -inf so they can never win.
    ids = jax.lax.broadcasted_iota(jnp.int32, (1, g_pad), 1)
    row = jnp.where(ids < n_groups, out[0:1, 0:g_pad], -jnp.inf)
    mx = jnp.max(row)
    # sentinel g_pad: in the pathological all-NaN case idx == g_pad and the
    # wrapper selects no head (semantic divergence from torch, documented).
    idx_ref[0] = jnp.min(jnp.where(row == mx, ids, g_pad)).astype(jnp.int32)


# ----------------------------------------------------------------------------
# pallas_call wrapper (jitted; one compiled program per shape configuration)
# ----------------------------------------------------------------------------
@functools.partial(jax.jit, static_argnames=("n_groups", "g_pad"))
def _fused_forward(x, w1, b1, wb, bb, *, n_groups, g_pad):
    batch = x.shape[0]
    w_pad = wb.shape[1]

    vmem = pl.BlockSpec(memory_space=pltpu.MemorySpace.VMEM)
    smem = pl.BlockSpec(memory_space=pltpu.MemorySpace.SMEM)

    kernel = functools.partial(_fused_kernel, n_groups=n_groups, g_pad=g_pad)
    out, idx = pl.pallas_call(
        kernel,
        out_shape=(
            jax.ShapeDtypeStruct((batch, w_pad), jnp.float32),  # [group | heads]
            jax.ShapeDtypeStruct((1,), jnp.int32),              # argmax group idx
        ),
        in_specs=[vmem] * 5,
        out_specs=(vmem, smem),
    )(x, w1, b1, wb, bb)
    return out, idx


# ----------------------------------------------------------------------------
# Module
# ----------------------------------------------------------------------------
class FlexibleHierarchicalDQN:
    """JAX/Pallas re-implementation of the PyTorch FlexibleHierarchicalDQN."""

    def __init__(self, num_states: int, num_action_groups: int,
                 num_actions_per_group: List[int], max_state: int, key):
        self.num_states = num_states
        self.n_groups = num_action_groups
        self.n_actions = list(num_actions_per_group)
        self.n_heads = len(num_actions_per_group)
        self.max_state = max_state

        # lane-aligned (128) padded output widths; in_features stay unpadded.
        self.M_pad = _round_up(max_state, _LANE)
        self.G_pad = _round_up(num_action_groups, _LANE)
        self.A_pad = _round_up(max(self.n_actions), _LANE)
        self.W_pad = self.G_pad + self.n_heads * self.A_pad

        def linear_init(k, in_f, out_f):
            # nn.Linear default init (PyTorch layout: (out, in)), then transpose.
            kw, kb = jax.random.split(k)
            bound = 1.0 / float(in_f) ** 0.5
            w = jax.random.uniform(kw, (out_f, in_f), jnp.float32, -bound, bound)
            b = jax.random.uniform(kb, (out_f,), jnp.float32, -bound, bound)
            return w.T, b                     # (in, out), (out,)

        keys = jax.random.split(key, 2 + self.n_heads)

        # state_reduction: (num_states, M_pad) — in dim unpadded (full-array spec),
        # out dim lane-padded with zeros.
        w1_t, b1 = linear_init(keys[0], num_states, max_state)
        self.w1 = (jnp.zeros((num_states, self.M_pad), jnp.float32)
                   .at[:, :max_state].set(w1_t))
        self.b1 = jnp.zeros((1, self.M_pad), jnp.float32).at[0, :max_state].set(b1)

        # Merged second-stage weight: [W2 | Wh_0 | ... | Wh_{n-1}] along lanes.
        wb = jnp.zeros((self.M_pad, self.W_pad), jnp.float32)
        bb = jnp.zeros((1, self.W_pad), jnp.float32)
        w2_t, b2 = linear_init(keys[1], max_state, num_action_groups)
        wb = wb.at[:max_state, :num_action_groups].set(w2_t)
        bb = bb.at[0, :num_action_groups].set(b2)
        for i, n in enumerate(self.n_actions):
            wh_t, bh = linear_init(keys[2 + i], max_state, n)
            off = self.G_pad + i * self.A_pad
            wb = wb.at[:max_state, off:off + n].set(wh_t)
            bb = bb.at[0, off:off + n].set(bh)
        self.wb = wb                          # (M_pad, W_pad)
        self.bb = bb                          # (1,    W_pad)

    # -- device-resident path: no host sync, for tight RL loops ---------------
    def forward_device(self, tensor: jnp.ndarray):
        """Returns (group_logits, head_logits[n_heads, batch, A_pad], idx[1])
        entirely on device — no .item(), no PCIe round trip."""
        out, idx = _fused_forward(tensor, self.w1, self.b1, self.wb, self.bb,
                                  n_groups=self.n_groups, g_pad=self.G_pad)
        batch = tensor.shape[0]
        group_logits = out[:, :self.n_groups]
        heads = out[:, self.G_pad:].reshape(batch, self.n_heads, self.A_pad)
        heads = jnp.swapaxes(heads, 0, 1)     # (n_heads, batch, A_pad)
        return group_logits, heads, idx

    # -- PyTorch-equivalent path: Python list with Nones (one host sync) ------
    def __call__(self, tensor: jnp.ndarray
                 ) -> Tuple[jnp.ndarray, List[Optional[jnp.ndarray]]]:
        batch = tensor.shape[0]
        # NOTE: like the PyTorch original (which calls .item()), head selection
        # inspects batch row 0; the trunk itself is batched.
        out, idx_arr = _fused_forward(tensor, self.w1, self.b1, self.wb, self.bb,
                                      n_groups=self.n_groups, g_pad=self.G_pad)

        # single host sync — only needed to build the Python list with Nones,
        # mirroring `.item()` in the original module.
        idx = int(jax.device_get(idx_arr)[0])

        group_logits = out[:batch, :self.n_groups]
        actions_logits: List[Optional[jnp.ndarray]] = [None] * self.n_heads
        if idx < self.n_heads:                # matches PyTorch: out-of-range
            off = self.G_pad + idx * self.A_pad       # group selects no head
            actions_logits[idx] = out[:batch, off:off + self.n_actions[idx]]
        return group_logits, actions_logits


# ----------------------------------------------------------------------------
# Demo / smoke test
# ----------------------------------------------------------------------------
if __name__ == "__main__":
    # MAX_STATE (= state_dim in the original file) chosen as 32.
    num_states = 16
    max_state = 32
    num_action_groups = 3                    # == len(num_actions_per_group)
    num_actions_per_group = [8, 6, 10]
    batch = 1  # forward() calls .item() on the argmax => single-sample batch

    key = jax.random.PRNGKey(0)
    key_params, key_input = jax.random.split(key)

    model = FlexibleHierarchicalDQN(
        num_states, num_action_groups, num_actions_per_group,
        max_state=max_state, key=key_params)

    x = jax.random.normal(key_input, (batch, num_states), jnp.float32)

    group_logits, actions_logits = model(x)
    jax.block_until_ready(group_logits)

    selected = [i for i, a in enumerate(actions_logits) if a is not None]
    assert len(selected) == 1
    idx = selected[0]
    jax.block_until_ready(actions_logits[idx])

    assert group_logits.shape == (batch, num_action_groups)
    assert actions_logits[idx].shape == (batch, num_actions_per_group[idx])

    # device-resident path: no host sync, same numbers
    gl_dev, heads_dev, idx_dev = model.forward_device(x)
    jax.block_until_ready(idx_dev)
    assert int(jax.device_get(idx_dev)[0]) == idx
    assert jnp.allclose(gl_dev, group_logits)
    assert jnp.allclose(heads_dev[idx, :, :num_actions_per_group[idx]],
                        actions_logits[idx])

    # numerical reference with plain XLA ops on the same padded params
    h_ref = jnp.maximum(x @ model.w1 + model.b1, 0.0)
    out_ref = h_ref @ model.wb + model.bb
    gl_ref = out_ref[:, :num_action_groups]
    off = model.G_pad + idx * model.A_pad
    head_ref = out_ref[:, off:off + num_actions_per_group[idx]]

    assert int(jnp.argmax(gl_ref[0])) == idx
    assert jnp.allclose(group_logits, gl_ref, atol=1e-4, rtol=1e-5)
    assert jnp.allclose(actions_logits[idx], head_ref, atol=1e-4, rtol=1e-5)

    print("KERNEL_OK")
</pallas_src>

<mosaic_0001>
module attributes {stable_mosaic.version = 11 : i64} {
  func.func @_fused_kernel(%arg0: memref<1x16xf32, #tpu.memory_space<vmem>>, %arg1: memref<16x128xf32, #tpu.memory_space<vmem>>, %arg2: memref<1x128xf32, #tpu.memory_space<vmem>>, %arg3: memref<128x512xf32, #tpu.memory_space<vmem>>, %arg4: memref<1x512xf32, #tpu.memory_space<vmem>>, %arg5: memref<1x512xf32, #tpu.memory_space<vmem>>, %arg6: memref<1xi32, #tpu.memory_space<smem>>) attributes {dimension_semantics = [], scalar_prefetch = 0 : i64, scratch_operands = 0 : i64, tpu.core_type = #tpu.core_type<tc>} {
    %c0 = arith.constant 0 : index
    %c0_0 = arith.constant 0 : index
    %0 = vector.load %arg0[%c0, %c0_0] : memref<1x16xf32, #tpu.memory_space<vmem>>, vector<1x16xf32>
    %c0_1 = arith.constant 0 : index
    %c0_2 = arith.constant 0 : index
    %1 = vector.load %arg1[%c0_1, %c0_2] : memref<16x128xf32, #tpu.memory_space<vmem>>, vector<16x128xf32>
    %cst = arith.constant dense<0.000000e+00> : vector<1x128xf32>
    %2 = tpu.matmul %0, %1, %cst {dimension_numbers = #tpu.dot_dimension_numbers<[1], [0], [0], [1], [0, 0, 1, 1], [], []>} : vector<1x16xf32>, vector<16x128xf32>, vector<1x128xf32> -> vector<1x128xf32>
    %c0_3 = arith.constant 0 : index
    %c0_4 = arith.constant 0 : index
    %3 = vector.load %arg2[%c0_3, %c0_4] : memref<1x128xf32, #tpu.memory_space<vmem>>, vector<1x128xf32>
    %4 = arith.addf %2, %3 : vector<1x128xf32>
    %cst_5 = arith.constant 0.000000e+00 : f32
    %5 = vector.broadcast %cst_5 : f32 to vector<1x128xf32>
    %6 = arith.maximumf %4, %5 : vector<1x128xf32>
    %c0_6 = arith.constant 0 : index
    %c0_7 = arith.constant 0 : index
    %7 = vector.load %arg3[%c0_6, %c0_7] : memref<128x512xf32, #tpu.memory_space<vmem>>, vector<128x512xf32>
    %cst_8 = arith.constant dense<0.000000e+00> : vector<1x512xf32>
    %8 = tpu.matmul %6, %7, %cst_8 {dimension_numbers = #tpu.dot_dimension_numbers<[1], [0], [0], [1], [0, 0, 1, 1], [], []>} : vector<1x128xf32>, vector<128x512xf32>, vector<1x512xf32> -> vector<1x512xf32>
    %c0_9 = arith.constant 0 : index
    %c0_10 = arith.constant 0 : index
    %9 = vector.load %arg4[%c0_9, %c0_10] : memref<1x512xf32, #tpu.memory_space<vmem>>, vector<1x512xf32>
    %10 = arith.addf %8, %9 : vector<1x512xf32>
    %c0_11 = arith.constant 0 : index
    %c0_12 = arith.constant 0 : index
    %11 = vector.load %arg5[%c0_11, %c0_12] : memref<1x512xf32, #tpu.memory_space<vmem>>, vector<1x512xf32>
    tpu.vector_store %arg5[%c0_11, %c0_12], %10 {strides = array<i32>} : memref<1x512xf32, #tpu.memory_space<vmem>>, vector<1x512xf32>,
    %12 = tpu.iota {dimensions = array<i32: 1>} : vector<1x128xi32>
    %c3_i32 = arith.constant 3 : i32
    %13 = vector.broadcast %c3_i32 : i32 to vector<1x128xi32>
    %14 = arith.cmpi slt, %12, %13 : vector<1x128xi32>
    %15 = vector.extract_strided_slice %10 {offsets = [0, 0], sizes = [1, 128], strides = [1, 1]} : vector<1x512xf32> to vector<1x128xf32>
    %cst_13 = arith.constant 0xFF800000 : f32
    %16 = vector.broadcast %cst_13 : f32 to vector<1x128xf32>
    %17 = arith.select %14, %15, %16 : vector<1x128xi1>, vector<1x128xf32>
    %18 = vector.shape_cast %17 : vector<1x128xf32> to vector<1x1x128xf32>
    %cst_14 = arith.constant dense<0xFF800000> : vector<1xf32>
    %19 = vector.multi_reduction <maximumf>, %18, %cst_14 [1, 2] : vector<1x1x128xf32> to vector<1xf32>
    %20 = vector.shape_cast %19 : vector<1xf32> to vector<1x1x1xf32>
    %21 = vector.extract %20[0, 0, 0] : f32 from vector<1x1x1xf32>
    %22 = vector.broadcast %21 : f32 to vector<1x128xf32>
    %23 = arith.cmpf oeq, %17, %22 : vector<1x128xf32>
    %c128_i32 = arith.constant 128 : i32
    %24 = vector.broadcast %c128_i32 : i32 to vector<1x128xi32>
    %25 = arith.select %23, %12, %24 : vector<1x128xi1>, vector<1x128xi32>
    %26 = vector.shape_cast %25 : vector<1x128xi32> to vector<1x1x128xi32>
    %cst_15 = arith.constant dense<2147483647> : vector<1xi32>
    %27 = vector.multi_reduction <minsi>, %26, %cst_15 [1, 2] : vector<1x1x128xi32> to vector<1xi32>
    %28 = vector.shape_cast %27 : vector<1xi32> to vector<1x1x1xi32>
    %29 = vector.extract %28[0, 0, 0] : i32 from vector<1x1x1xi32>
    %c0_16 = arith.constant 0 : index
    %30 = memref.load %arg6[%c0_16] : memref<1xi32, #tpu.memory_space<smem>>
    memref.store %29, %arg6[%c0_16] : memref<1xi32, #tpu.memory_space<smem>>
    return
  }
}

</mosaic_0001>

<bundles_post_ra>
// kernel: _fused_forward.1
= control target key start
LH: loop header
LB: loop body
LE: loop exit
PB: predicated region body
PF: predicated region fallthrough
CT: control target
= control target key end

     0   :  { %12 = vsyncpa [#allocation3], 0  ;;  %s676_s0 = inlined_call_operand.hbm [shape: f32[1,16], index: 0, kind: input, shape index: {}]   ;;  %s677_s1 = inlined_call_operand.hbm [shape: f32[16,128], index: 1, kind: input, shape index: {}]   ;;  %s678_s2 = inlined_call_operand.vmem [shape: f32[1,128], index: 2, kind: input, shape index: {}]   ;;  %s679_s3 = inlined_call_operand.hbm [shape: f32[128,512], index: 3, kind: input, shape index: {}]   ;;  %s680_s4 = inlined_call_operand.vmem [shape: f32[1,512], index: 4, kind: input, shape index: {}]   ;;  %s681_s5 = inlined_call_operand.hbm [shape: f32[1,512], index: 5, kind: output, shape index: {0}]   ;;  %s682_s6 = inlined_call_operand.hbm [shape: s32[1], index: 6, kind: output, shape index: {1}]  }
   0x1   :  { %13 = vsyncpa [#allocation7], 0 }
   0x2   :  { %14 = vsyncpa [#allocation4], 0 }
   0x3   :  { %15 = vsyncpa [#allocation5], 0  ;;  %s601_s21 = smov [#allocation6]  }
   0x4   :  { %s31_s22 = sshll.u32 %s601_s21, 4  ;;  %s32_s22 = int_to_ptr.vmem [resolvable:$true] %s31_s22 }
   0x5   :  { %s513_s23 = scalar_lea.vmem %s32_s22, 256  ;;  %p518_p1 = scmp.lt.s32.totalorder %s32_s22, %s32_s22 }
   0x6   :  { %p514_p0 = scmp.ne.s32.totalorder %s32_s22, %s513_s23  ;;  %p519_p2 = scmp.lt.s32.totalorder %s513_s23, %s513_s23 }
   0x8   :  { %p520_p3 = por %p519_p2, %p518_p1 }
   0xa   :  { %p521_p4 = pnand %p520_p3, %p514_p0 }
   0xc   :  { %524 = shalt.err (!%p521_p4)
}
   0xd   :  { %s602_s24 = smov 128   ;;  %s603_s25 = smov 8  }
   0xe   :  { %37 = dma.hbm_to_vmem [thread:$0]  %s677_s1, 256, %s32_s22, [#allocation7], %s602_s24, %s602_s24, %s603_s25  }
   0xf   :  { %s604_s28 = smov [#allocation2]   ;;  %s605_s30 = smov [#allocation8]  }
  0x10   :  { %s22_s29 = sshll.u32 %s604_s28, 4  ;;  %s45_s7 = sshll.u32 %s605_s30, 4  ;;  %s23_s29 = int_to_ptr.vmem [resolvable:$true] %s22_s29  ;;  %s46_s7 = int_to_ptr.vmem [resolvable:$true] %s45_s7 }
  0x11   :  { %s533_s8 = scalar_lea.vmem %s23_s29, 16  ;;  %s537_s9 = scalar_lea.vmem %s23_s29, 32 }
  0x12   :  { %p534_p5 = scmp.ne.s32.totalorder %s23_s29, %s533_s8  ;;  %p538_p6 = scmp.lt.s32.totalorder %s23_s29, %s23_s29 }
  0x13   :  { %p539_p7 = scmp.lt.s32.totalorder %s537_s9, %s533_s8 }
  0x15   :  { %p540_p8 = por %p539_p7, %p538_p6 }
  0x17   :  { %p541_p9 = pnand %p540_p8, %p534_p5 }
  0x19   :  { %544 = shalt.err (!%p541_p9)
}
  0x1a   :  { %25 = dma.hbm_to_vmem [thread:$0]  %s676_s0, 16, %s23_s29, [#allocation3]  }
  0x1b   :  { %s553_s12 = scalar_lea.vmem %s46_s7, 8192  ;;  %p558_p11 = scmp.lt.s32.totalorder %s46_s7, %s46_s7 }
  0x1c   :  { %p554_p10 = scmp.ne.s32.totalorder %s46_s7, %s553_s12  ;;  %p559_p12 = scmp.lt.s32.totalorder %s553_s12, %s553_s12 }
  0x1e   :  { %p560_p13 = por %p559_p12, %p558_p11 }
  0x20   :  { %p561_p0 = pnand %p560_p13, %p554_p10 }
  0x22   :  { %564 = shalt.err (!%p561_p0)
}
  0x23   :  { %s606_s1 = smov 512   ;;  %s607_s13 = smov 32  }
  0x24   :  { %51 = dma.hbm_to_vmem [thread:$0]  %s679_s3, 8192, %s46_s7, [#allocation7], %s606_s1, %s606_s1, %s607_s13  }
  0x25   :  { %593 = dma.done.wait [#allocation3], 16  }
  0x26   :  { %594 = vsyncadd [#allocation3], 4294967280 }
  0x27   :  { %595 = dma.done.wait [#allocation7], 8448  }
  0x28   :  { %596 = vsyncadd [#allocation7], 4294958848  ;;  %v608_v0 = vmov 0.0   ;;  %vm609_vm0 = vmmov 0   ;;  %v65_v1 = vld [vmem:[#allocation6 + $0x8] sm:$0xff]  ;;  %v64_v2 = vld [vmem:[#allocation6] sm:$0xff] }
  0x29   :  { %482 = vmatprep.subr.mxu0 %v608_v0  ;;  %486 = vmatprep.mubr.msk.f32.mxu0 %vm609_vm0, %v608_v0  ;;  %v63_v3 = vld [vmem:[#allocation2] sm:$0x1]  ;;  %vm67_vm1 = vcmask 130048   ;;  %v205_v5 = vld [vmem:[#allocation8 + $0x1f8] sm:$0xff]  ;;  %v202_v6 = vld [vmem:[#allocation8 + $0x1e0] sm:$0xff]  ;;  %vm408_vm3 = vcmask 1040384  }
  0x2a   :  { %292 = vmatprep.mubr.f32.mxu1 %v608_v0  ;;  %483 = vmatpush3.msra.mxu0 %v65_v1  ;;  %v203_v4 = vld [vmem:[#allocation8 + $0x1e8] sm:$0xff]  ;;  %v204_v7 = vld [vmem:[#allocation8 + $0x1f0] sm:$0xff]  ;;  %v201_v9 = vld [vmem:[#allocation8 + $0x1d8] sm:$0xff] }
  0x2b   :  { %484 = vmatprep.subr.mxu0 %v608_v0  ;;  %228 = vmatprep.subr.mxu1 %v203_v4  ;;  %v199_v8 = vld [vmem:[#allocation8 + $0x1c8] sm:$0xff]  ;;  %v198_v10 = vld [vmem:[#allocation8 + $0x1c0] sm:$0xff]  ;;  %v200_v11 = vld [vmem:[#allocation8 + $0x1d0] sm:$0xff] }
  0x2c   :  { %485 = vmatpush3.msra.mxu0 %v64_v2  ;;  %229 = vmatpush1.msra.mxu1 %v202_v6  ;;  %v195_v12 = vld [vmem:[#allocation8 + $0x1a8] sm:$0xff]  ;;  %v197_v13 = vld [vmem:[#allocation8 + $0x1b8] sm:$0xff]  ;;  %v194_v14 = vld [vmem:[#allocation8 + $0x1a0] sm:$0xff] }
  0x2d   :  { %487 = vmatmul.mubr.msk.f32.vlgmr.msra.gmra.mxu0 %vm67_vm1, %v63_v3  ;;  %299 = vmatprep.subr.mxu0 %v205_v5  ;;  %v196_v15 = vld [vmem:[#allocation8 + $0x1b0] sm:$0xff]  ;;  %v191_v16 = vld [vmem:[#allocation8 + $0x188] sm:$0xff]  ;;  %v193_v17 = vld [vmem:[#allocation8 + $0x198] sm:$0xff] }
  0x2e   :  { %300 = vmatpush1.msra.mxu0 %v204_v7  ;;  %230 = vmatprep.subr.mxu1 %v199_v8  ;;  %v190_v18 = vld [vmem:[#allocation8 + $0x180] sm:$0xff]  ;;  %v192_v19 = vld [vmem:[#allocation8 + $0x190] sm:$0xff]  ;;  %v187_v20 = vld [vmem:[#allocation8 + $0x168] sm:$0xff] }
  0x2f   :  { %301 = vmatprep.subr.mxu0 %v201_v9  ;;  %231 = vmatpush1.msra.mxu1 %v198_v10  ;;  %v189_v21 = vld [vmem:[#allocation8 + $0x178] sm:$0xff]  ;;  %v186_v22 = vld [vmem:[#allocation8 + $0x160] sm:$0xff]  ;;  %v188_v23 = vld [vmem:[#allocation8 + $0x170] sm:$0xff]  ;;  %v208_v9 = vlaneseq }
  0x30   :  { %302 = vmatpush1.msra.mxu0 %v200_v11  ;;  %232 = vmatprep.subr.mxu1 %v195_v12  ;;  %v183_v24 = vld [vmem:[#allocation8 + $0x148] sm:$0xff]  ;;  %v185_v25 = vld [vmem:[#allocation8 + $0x158] sm:$0xff]  ;;  %v182_v26 = vld [vmem:[#allocation8 + $0x140] sm:$0xff] }
  0x31   :  { %303 = vmatprep.subr.mxu0 %v197_v13  ;;  %233 = vmatpush1.msra.mxu1 %v194_v14  ;;  %v184_v27 = vld [vmem:[#allocation8 + $0x150] sm:$0xff]  ;;  %v179_v28 = vld [vmem:[#allocation8 + $0x128] sm:$0xff]  ;;  %v181_v29 = vld [vmem:[#allocation8 + $0x138] sm:$0xff]  ;;  %v209_v10 = vshrl.u32 %v208_v9, 7  ;;  %v610_v13 = vmov 1966171168  }
  0x32   :  { %304 = vmatpush1.msra.mxu0 %v196_v15  ;;  %234 = vmatprep.subr.mxu1 %v191_v16  ;;  %v178_v30 = vld [vmem:[#allocation8 + $0x120] sm:$0xff]  ;;  %v180_v31 = vld [vmem:[#allocation8 + $0x130] sm:$0xff]  ;;  %v175_v32 = vld [vmem:[#allocation8 + $0x108] sm:$0xff]  ;;  %v377_v14 = vunpack.c.l.s4 %v610_v13  ;;  %vm401_vm4 = vcmp.lt.s32.totalorder %v208_v9, 512 }
  0x33   :  { %305 = vmatprep.subr.mxu0 %v193_v17  ;;  %235 = vmatpush1.msra.mxu1 %v190_v18  ;;  %v177_v33 = vld [vmem:[#allocation8 + $0x118] sm:$0xff]  ;;  %v174_v34 = vld [vmem:[#allocation8 + $0x100] sm:$0xff]  ;;  %v176_v35 = vld [vmem:[#allocation8 + $0x110] sm:$0xff]  ;;  %v210_v11 = vsub.s32 0, %v209_v10  ;;  %v218_v15 = vsub.s32 2, %v209_v10  ;;  %v214_v16 = vsub.s32 1, %v209_v10 }
  0x34   :  { %306 = vmatpush1.msra.mxu0 %v192_v19  ;;  %236 = vmatprep.subr.mxu1 %v187_v20  ;;  %v171_v36 = vld [vmem:[#allocation8 + $0xe8] sm:$0xff]  ;;  %v173_v37 = vld [vmem:[#allocation8 + $0xf8] sm:$0xff]  ;;  %v170_v38 = vld [vmem:[#allocation8 + $0xe0] sm:$0xff]  ;;  %v222_v17 = vsub.s32 3, %v209_v10  ;;  %v405_v18 = vand.u32 127, %v208_v9  ;;  %v378_v20 = vunpack.c.0.s8 %v377_v14 }
  0x35   :  { %307 = vmatprep.subr.mxu0 %v189_v21  ;;  %237 = vmatpush1.msra.mxu1 %v186_v22  ;;  %v172_v39 = vld [vmem:[#allocation8 + $0xf0] sm:$0xff]  ;;  %v167_v40 = vld [vmem:[#allocation8 + $0xc8] sm:$0xff]  ;;  %v169_v41 = vld [vmem:[#allocation8 + $0xd8] sm:$0xff] }
  0x36   :  { %308 = vmatpush1.msra.mxu0 %v188_v23  ;;  %238 = vmatprep.subr.mxu1 %v183_v24  ;;  %v166_v42 = vld [vmem:[#allocation8 + $0xc0] sm:$0xff]  ;;  %v168_v43 = vld [vmem:[#allocation8 + $0xd0] sm:$0xff]  ;;  %v163_v44 = vld [vmem:[#allocation8 + $0xa8] sm:$0xff]  ;;  %vm406_vm2 = vcmp.lt.s32.totalorder %v405_v18, 3 }
  0x37   :  { %309 = vmatprep.subr.mxu0 %v185_v25  ;;  %239 = vmatpush1.msra.mxu1 %v182_v26  ;;  %v165_v45 = vld [vmem:[#allocation8 + $0xb8] sm:$0xff]  ;;  %v162_v46 = vld [vmem:[#allocation8 + $0xa0] sm:$0xff]  ;;  %v164_v47 = vld [vmem:[#allocation8 + $0xb0] sm:$0xff] }
  0x38   :  { %310 = vmatpush1.msra.mxu0 %v184_v27  ;;  %240 = vmatprep.subr.mxu1 %v179_v28  ;;  %v159_v48 = vld [vmem:[#allocation8 + $0x88] sm:$0xff]  ;;  %v161_v49 = vld [vmem:[#allocation8 + $0x98] sm:$0xff]  ;;  %v158_v50 = vld [vmem:[#allocation8 + $0x80] sm:$0xff]  ;;  %v381_v28 = vsub.s32 %v378_v20, %v209_v10 }
  0x39   :  { %311 = vmatprep.subr.mxu0 %v181_v29  ;;  %241 = vmatpush1.msra.mxu1 %v178_v30  ;;  %v160_v51 = vld [vmem:[#allocation8 + $0x90] sm:$0xff]  ;;  %v155_v52 = vld [vmem:[#allocation8 + $0x68] sm:$0xff]  ;;  %v157_v53 = vld [vmem:[#allocation8 + $0x78] sm:$0xff] }
  0x3a   :  { %312 = vmatpush1.msra.mxu0 %v180_v31  ;;  %242 = vmatprep.subr.mxu1 %v175_v32  ;;  %v154_v54 = vld [vmem:[#allocation8 + $0x60] sm:$0xff]  ;;  %v156_v55 = vld [vmem:[#allocation8 + $0x70] sm:$0xff]  ;;  %v151_v56 = vld [vmem:[#allocation8 + $0x48] sm:$0xff] }
  0x3b   :  { %313 = vmatprep.subr.mxu0 %v177_v33  ;;  %243 = vmatpush1.msra.mxu1 %v174_v34  ;;  %v153_v57 = vld [vmem:[#allocation8 + $0x58] sm:$0xff]  ;;  %v150_v58 = vld [vmem:[#allocation8 + $0x40] sm:$0xff]  ;;  %v152_v59 = vld [vmem:[#allocation8 + $0x50] sm:$0xff] }
  0x3c   :  { %314 = vmatpush1.msra.mxu0 %v176_v35  ;;  %244 = vmatprep.subr.mxu1 %v171_v36  ;;  %v147_v60 = vld [vmem:[#allocation8 + $0x28] sm:$0xff]  ;;  %v149_v61 = vld [vmem:[#allocation8 + $0x38] sm:$0xff]  ;;  %v146_v62 = vld [vmem:[#allocation8 + $0x20] sm:$0xff] }
  0x3d   :  { %315 = vmatprep.subr.mxu0 %v173_v37  ;;  %245 = vmatpush1.msra.mxu1 %v170_v38  ;;  %v148_v63 = vld [vmem:[#allocation8 + $0x30] sm:$0xff]  ;;  %v143_v1 = vld [vmem:[#allocation8 + $0x8] sm:$0xff]  ;;  %v145_v2 = vld [vmem:[#allocation8 + $0x18] sm:$0xff] }
  0x3e   :  { %316 = vmatpush1.msra.mxu0 %v172_v39  ;;  %246 = vmatprep.subr.mxu1 %v167_v40  ;;  %v142_v3 = vld [vmem:[#allocation8] sm:$0xff]  ;;  %v144_v4 = vld [vmem:[#allocation8 + $0x10] sm:$0xff] }
  0x3f   :  { %317 = vmatprep.subr.mxu0 %v169_v41  ;;  %247 = vmatpush1.msra.mxu1 %v166_v42  ;;  %v206_v12 = vld [vmem:[%s680_s4] sm:$0xf]  ;;  %s611_s4 = smov [#allocation9]  }
  0x40   :  { %318 = vmatpush1.msra.mxu0 %v168_v43  ;;  %248 = vmatprep.subr.mxu1 %v163_v44  ;;  %v211_v19 = vrot.slane %v206_v12, %v210_v11  ;;  %v219_v21 = vrot.slane %v206_v12, %v218_v15  ;;  %v215_v22 = vrot.slane %v206_v12, %v214_v16  ;;  %s455_s18 = sshll.u32 %s611_s4, 4  ;;  %s456_s18 = int_to_ptr.vmem [resolvable:$true] %s455_s18 }
  0x41   :  { %319 = vmatprep.subr.mxu0 %v165_v45  ;;  %249 = vmatpush1.msra.mxu1 %v162_v46  ;;  %v223_v23 = vrot.slane %v206_v12, %v222_v17  ;;  %s565_s19 = scalar_lea.vmem %s456_s18, 64  ;;  %p570_p2 = scmp.lt.s32.totalorder %s456_s18, %s456_s18 }
  0x42   :  { %320 = vmatpush1.msra.mxu0 %v164_v47  ;;  %250 = vmatprep.subr.mxu1 %v159_v48  ;;  %p566_p1 = scmp.ne.s32.totalorder %s456_s18, %s565_s19  ;;  %p571_p3 = scmp.lt.s32.totalorder %s565_s19, %s565_s19 }
  0x43   :  { %321 = vmatprep.subr.mxu0 %v161_v49  ;;  %251 = vmatpush1.msra.mxu1 %v158_v50 }
  0x44   :  { %322 = vmatpush1.msra.mxu0 %v160_v51  ;;  %252 = vmatprep.subr.mxu1 %v155_v52  ;;  %p572_p4 = por %p571_p3, %p570_p2 }
  0x45   :  { %323 = vmatprep.subr.mxu0 %v157_v53  ;;  %253 = vmatpush1.msra.mxu1 %v154_v54 }
  0x46   :  { %324 = vmatpush1.msra.mxu0 %v156_v55  ;;  %254 = vmatprep.subr.mxu1 %v151_v56  ;;  %p573_p5 = pnand %p572_p4, %p566_p1 }
  0x47   :  { %325 = vmatprep.subr.mxu0 %v153_v57  ;;  %363 = vmatprep.mubr.f32.mxu0 %v608_v0  ;;  %v66_v0 = vld [vmem:[%s678_s2] sm:$0x1] }
  0x48   :  { %255 = vmatpush1.msra.mxu1 %v150_v58  ;;  %326 = vmatpush1.msra.mxu0 %v152_v59 }
  0x49   :  { %256 = vmatprep.subr.mxu1 %v147_v60  ;;  %327 = vmatprep.subr.mxu0 %v149_v61 }
  0x4a   :  { %257 = vmatpush1.msra.mxu1 %v146_v62  ;;  %328 = vmatpush1.msra.mxu0 %v148_v63 }
  0x4b   :  { %258 = vmatprep.subr.mxu1 %v143_v1  ;;  %329 = vmatprep.subr.mxu0 %v145_v2 }
  0x4c   :  { %259 = vmatpush1.msra.mxu1 %v142_v3  ;;  %330 = vmatpush1.msra.mxu0 %v144_v4 }
  0xed   :  { %v137_v5 = vpop.f32.mrf.mxu0 }
  0xee   :  { %v138_v6 = vadd.f32 %v137_v5, %v66_v0 }
  0xef   :  { %v488_v7 = vpop.f32.mrf.mxu0 }
  0xf0   :  { %v141_v8 = vmax.f32 %v138_v6, 0.0 }
  0xf2   :  { %293 = vmatmul.mubr.f32.vlgmr.msra.gmra.mxu1 %v141_v8  ;;  %364 = vmatmul.mubr.f32.vlgmr.msra.gmra.mxu0 %v141_v8 }
 0x1b2   :  { %v294_v24 = vpop.f32.mrf.mxu1  ;;  %v365_v25 = vpop.f32.mrf.mxu0 }
 0x1b3   :  { %v295_v26 = vadd.f32 %v294_v24, %v211_v19  ;;  %v366_v30 = vadd.f32 %v365_v25, %v219_v21 }
 0x1b4   :  { %v296_v27 = vpop.f32.mrf.mxu1  ;;  %v367_v29 = vpop.f32.mrf.mxu0 }
 0x1b5   :  { %v297_v31 = vadd.f32 %v296_v27, %v215_v22  ;;  %v368_v32 = vadd.f32 %v367_v29, %v223_v23  ;;  %v407_v33 = vsel %vm406_vm2, %v295_v26, -inf }
 0x1b6   :  { %v409_v34 = vsel %vm408_vm3, %v407_v33, -inf }
 0x1b7   :  { %v374_v35 = vcombine.low %v295_v26, %v297_v31  ;;  %v375_v36 = vcombine.low %v366_v30, %v368_v32  ;;  %410 = vmax.xlane.f32.xlu0 %v409_v34 }
 0x1b9   :  { %v382_v37 = vrot.slane %v374_v35, %v381_v28  ;;  %v389_v38 = vrot.slane %v375_v36, %v381_v28 }
 0x1bb   :  { %v390_v39 = vcombine.low %v382_v37, %v389_v38 }
 0x1bd   :  { %v397_v40 = vrot.slane %v390_v39, %v381_v28 }
 0x1bf   :  { %403 = vst.msk [vmem:[#allocation9] sm:$0xf] %vm401_vm4, %v397_v40 }
 0x240   :  { %v411_v41 = vpop.xlane.xlu0 %410 }
 0x241   :  { %v412_v42 = vrot.slane %v411_v41, 4 }
 0x243   :  { %v413_v43 = vmax.f32 %v411_v41, %v412_v42 }
 0x245   :  { %v414_v44 = vrot.slane %v413_v43, 2 }
 0x247   :  { %v415_v45 = vmax.f32 %v413_v43, %v414_v44 }
 0x249   :  { %v416_v46 = vrot.slane %v415_v45, 1 }
 0x24b   :  { %v417_v47 = vmax.f32 %v415_v45, %v416_v46 }
 0x24d   :  { %489 = vpush %v417_v47 }
 0x27e   :  { %s490_s2 = spop %489 }
 0x27f   :  { %v419_v48 = vstv %s490_s2 }
 0x280   :  { %vm420_vm5 = vcmp.eq.f32.partialorder %v407_v33, %v419_v48 }
 0x281   :  { %v421_v49 = vsel %vm420_vm5, %v405_v18, 128 }
 0x282   :  { %v422_v50 = vsel %vm408_vm3, %v421_v49, 2147483647 }
 0x283   :  { %v424_v51 = vshra.s32 %v422_v50, 16  ;;  %v423_v53 = vand.u32 65535, %v422_v50 }
 0x285   :  { %v426_v52 = vcvt.s32.f32 %v424_v51  ;;  %v425_v55 = vcvt.s32.f32 %v423_v53 }
 0x287   :  { %427 = vmin.xlane.f32.xlu0 %v426_v52 }
 0x310   :  { %v428_v54 = vpop.xlane.xlu0 %427 }
 0x311   :  { %vm429_vm6 = vcmp.eq.f32.partialorder %v426_v52, %v428_v54 }
 0x312   :  { %v430_v56 = vsel %vm429_vm6, %v425_v55, inf }
 0x313   :  { %431 = vmin.xlane.f32.xlu1 %v430_v56 }
 0x314   :  { %576 = shalt.err (!%p573_p5)
}
 0x315   :  { %458 = dma.vmem_to_hbm [thread:$0]  %s456_s18, 64, %s681_s5, [#allocation4]   ;;  %v434_v57 = vcvt.f32.s32 %v428_v54 }
 0x316   :  { %s612_s23 = smov [#allocation10]  }
 0x317   :  { %v435_v59 = vshll.u32 %v434_v57, 16 }
 0x39c   :  { %v432_v58 = vpop.xlane.xlu1 %431 }
 0x39d   :  { %v433_v60 = vcvt.f32.s32 %v432_v58 }
 0x39f   :  { %v436_v61 = vadd.s32 %v435_v59, %v433_v60 }
 0x3a1   :  { %v437_v62 = vrot.slane %v436_v61, 4 }
 0x3a3   :  { %vm438_vm7 = vcmp.lt.s32.totalorder %v436_v61, %v437_v62 }
 0x3a4   :  { %v439_v63 = vsel %vm438_vm7, %v436_v61, %v437_v62 }
 0x3a5   :  { %v440_v1 = vrot.slane %v439_v63, 2 }
 0x3a7   :  { %vm441_vm8 = vcmp.lt.s32.totalorder %v439_v63, %v440_v1 }
 0x3a8   :  { %v442_v2 = vsel %vm441_vm8, %v439_v63, %v440_v1 }
 0x3a9   :  { %v443_v3 = vrot.slane %v442_v2, 1 }
 0x3ab   :  { %vm444_vm9 = vcmp.lt.s32.totalorder %v442_v2, %v443_v3 }
 0x3ac   :  { %v445_v4 = vsel %vm444_vm9, %v442_v2, %v443_v3 }
 0x3ad   :  { %491 = vpush %v445_v4 }
 0x3de   :  { %s492_s22 = spop %491 }
 0x3df   :  { %448 = sst [smem:[#allocation10]] %s492_s22 }
 0x3e0   :  { %466 = dma.smem_to_hbm %s612_s23, 16, %s682_s6, [#allocation5]  }
 0x3e1   :  { %597 = dma.done.wait [#allocation4], 64  }
 0x3e2   :  { %598 = vsyncadd [#allocation4], 4294967232 }
 0x3e3   :  { %599 = dma.done.wait [#allocation5], 16  }
 0x3e4   :  { %600 = vsyncadd [#allocation5], 4294967280 }
 0x3e5   :  { %473 = sfence }
 0x3e6   :  { %474 = vsyncpa [#allocation3], 1 }
 0x3e7   :  { %475 = vsyncpa [#allocation7], 1 }
 0x3e8   :  { %476 = vsyncpa [#allocation4], 1 }
 0x3e9   :  { %477 = vsyncpa [#allocation5], 1 }

</bundles_post_ra>
